<compile_context>
chip_gen: v5e
topology: v5e:2x2
jax: 0.10.0
libtpu: 0.0.40
codegen_flags: <defaults>
</compile_context>

<pallas_src>
import math

import jax
import jax.numpy as jnp
from jax import lax
from jax.experimental import pallas as pl
from jax.experimental.pallas import tpu as pltpu

_LANES = 128
_MAX_TILE_ROWS = 2048          # 2048 * 128 * 4 B = 1 MiB per f32 buffer


def _round_up(x: int, m: int) -> int:
    return ((x + m - 1) // m) * m


def _i32(v: int):
    """Python int -> int32 constant (two's-complement wrap for >= 2**31)."""
    v &= 0xFFFFFFFF
    if v >= 1 << 31:
        v -= 1 << 32
    return jnp.int32(v)


def _fmix32(h):
    """murmur3 finalizer; logical shifts + wrapping int32 multiplies."""
    h = h ^ lax.shift_right_logical(h, jnp.int32(16))
    h = h * _i32(0x85EBCA6B)
    h = h ^ lax.shift_right_logical(h, jnp.int32(13))
    h = h * _i32(0xC2B2AE35)
    h = h ^ lax.shift_right_logical(h, jnp.int32(16))
    return h


# Giles (2010) single-precision erfinv approximation (Horner, high order first).
_ERFINV_CENTRAL = (2.81022636e-08, 3.43273939e-07, -3.5233877e-06,
                   -4.39150654e-06, 0.00021858087, -0.00125372503,
                   -0.00417768164, 0.246640727, 1.50140941)
_ERFINV_TAIL = (-0.000200214257, 0.000100950558, 0.00134934322,
                -0.00367342844, 0.00573950773, -0.0076224613,
                0.00943887047, 1.00167406, 2.83297682)


def _horner(coeffs, w):
    p = jnp.float32(coeffs[0])
    for c in coeffs[1:]:
        p = p * w + jnp.float32(c)
    return p


def _std_normal_from_bits(bits):
    """int32 random words -> standard normal f32 (inverse-CDF, branch-free)."""
    # Top-23 bits -> mantissa of a float in [1, 2) (no int->float convert).
    mant = lax.shift_right_logical(bits, jnp.int32(9))
    fbits = jnp.bitwise_or(mant, jnp.int32(0x3F800000))
    f = lax.bitcast_convert_type(fbits, jnp.float32)           # [1, 2)
    u = (f - 1.0) + jnp.float32(2.0 ** -24)                    # (0, 1) strictly
    x = 2.0 * u - 1.0                                          # (-1, 1) strictly
    w = -jnp.log((1.0 - x) * (1.0 + x))                        # finite, <= ~16
    p = jnp.where(w < 5.0,
                  _horner(_ERFINV_CENTRAL, w - 2.5),
                  _horner(_ERFINV_TAIL, jnp.sqrt(w) - 3.0))
    return jnp.float32(math.sqrt(2.0)) * p * x                 # N(0, 1)


def _sampling_kernel(seed_ref, z_mean_ref, z_log_var_ref, z_ref):
    rows, lanes = z_ref.shape

    # Unique 32-bit counter per element; offset by the grid position so every
    # tile draws an independent slice of the stream.  Seed folded in (with a
    # nonzero constant so seed=0, counter=0 does not hash to 0).
    row = lax.broadcasted_iota(jnp.int32, (rows, lanes), 0)
    col = lax.broadcasted_iota(jnp.int32, (rows, lanes), 1)
    idx = row * lanes + col + pl.program_id(0) * (rows * lanes)
    bits = _fmix32(idx ^ (seed_ref[0] + jnp.int32(0x243F6A88)))
    eps = _std_normal_from_bits(bits)

    # Reparameterization, all in f32; single cast at the store.
    mean = z_mean_ref[...].astype(jnp.float32)
    std = jnp.exp(0.5 * z_log_var_ref[...].astype(jnp.float32))
    z_ref[...] = (mean + eps * std).astype(z_ref.dtype)


def sampling(z_mean, z_log_var, seed: int = 0):
    """Pallas equivalent of Sampling.forward(z_mean, z_log_var)."""
    assert z_mean.shape == z_log_var.shape
    orig_shape = z_mean.shape
    out_dtype = z_mean.dtype
    n = math.prod(orig_shape)

    # Lane-dense layout: flatten -> (rows_pad, 128), tiled along rows.
    rows = pl.cdiv(n, _LANES)
    tile_rows = min(_MAX_TILE_ROWS, _round_up(rows, 16))
    rows_pad = _round_up(rows, tile_rows)
    pad = rows_pad * _LANES - n

    def _prep(x):
        x = x.reshape(-1)
        if pad:
            x = jnp.pad(x, (0, pad))
        return x.reshape(rows_pad, _LANES)

    zm = _prep(z_mean)
    zlv = _prep(z_log_var)
    seed_arr = jnp.array([seed], dtype=jnp.int32)

    grid = (rows_pad // tile_rows,)
    out = pl.pallas_call(
        _sampling_kernel,
        out_shape=jax.ShapeDtypeStruct((rows_pad, _LANES), out_dtype),
        grid_spec=pltpu.PrefetchScalarGridSpec(
            num_scalar_prefetch=1,                 # seed -> SMEM
            grid=grid,
            in_specs=[
                pl.BlockSpec((tile_rows, _LANES), lambda i, s: (i, 0)),
                pl.BlockSpec((tile_rows, _LANES), lambda i, s: (i, 0)),
            ],
            out_specs=pl.BlockSpec((tile_rows, _LANES), lambda i, s: (i, 0)),
        ),
        compiler_params=pltpu.CompilerParams(
            dimension_semantics=("parallel",),     # 2-TC split on v7x
        ),
    )(seed_arr, zm, zlv)

    return out.reshape(-1)[:n].reshape(orig_shape)


if __name__ == "__main__":
    key = jax.random.PRNGKey(0)
    k1, k2, k3, k4 = jax.random.split(key, 4)

    # Small VAE-style latents: (batch, latent_dim).
    B, D = 2, 32
    z_mean = jax.random.normal(k1, (B, D), dtype=jnp.float32)
    z_log_var = 0.1 * jax.random.normal(k2, (B, D), dtype=jnp.float32)

    z = jax.block_until_ready(sampling(z_mean, z_log_var, seed=0))
    assert z.shape == (B, D) and z.dtype == jnp.float32
    assert bool(jnp.all(jnp.isfinite(z)))
    std = jnp.exp(0.5 * z_log_var)
    assert bool(jnp.all(jnp.abs(z - z_mean) < 8.0 * std))

    # Larger call exercising padding + a multi-tile grid; the implied epsilon
    # should look like N(0, 1).
    B2, D2 = 4096, 96
    m2 = jax.random.normal(k3, (B2, D2), dtype=jnp.float32)
    lv2 = 0.1 * jax.random.normal(k4, (B2, D2), dtype=jnp.float32)
    z2 = jax.block_until_ready(sampling(m2, lv2, seed=7))
    eps = (z2 - m2) / jnp.exp(0.5 * lv2)
    assert bool(jnp.all(jnp.isfinite(eps)))
    assert abs(float(jnp.mean(eps))) < 0.1
    assert abs(float(jnp.std(eps)) - 1.0) < 0.1
    assert float(jnp.max(jnp.abs(eps))) < 6.0

    print("KERNEL_OK")
</pallas_src>

<mosaic_0001>
module attributes {stable_mosaic.version = 11 : i64} {
  func.func @_sampling_kernel(%arg0: i32, %arg1: memref<1xi32, #tpu.memory_space<smem>>, %arg2: memref<16x128xf32, #tpu.memory_space<vmem>>, %arg3: memref<16x128xf32, #tpu.memory_space<vmem>>, %arg4: memref<16x128xf32, #tpu.memory_space<vmem>>) attributes {dimension_semantics = [#tpu.dimension_semantics<parallel>], iteration_bounds = array<i64: 1>, scalar_prefetch = 1 : i64, scratch_operands = 0 : i64, tpu.core_type = #tpu.core_type<tc>, window_params = [{transform_indices = @transform_0, window_bounds = array<i64: 16, 128>}, {transform_indices = @transform_1, window_bounds = array<i64: 16, 128>}, {transform_indices = @transform_2, window_bounds = array<i64: 16, 128>}]} {
    %0 = tpu.iota {dimensions = array<i32: 0>} : vector<16x128xi32>
    %1 = tpu.iota {dimensions = array<i32: 1>} : vector<16x128xi32>
    %c128_i32 = arith.constant 128 : i32
    %2 = vector.broadcast %c128_i32 : i32 to vector<16x128xi32>
    %3 = arith.muli %0, %2 : vector<16x128xi32>
    %4 = arith.addi %3, %1 : vector<16x128xi32>
    %c2048_i32 = arith.constant 2048 : i32
    %5 = arith.muli %arg0, %c2048_i32 : i32
    %6 = vector.broadcast %5 : i32 to vector<16x128xi32>
    %7 = arith.addi %4, %6 : vector<16x128xi32>
    %c0 = arith.constant 0 : index
    %8 = memref.load %arg1[%c0] : memref<1xi32, #tpu.memory_space<smem>>
    %c608135816_i32 = arith.constant 608135816 : i32
    %9 = arith.addi %8, %c608135816_i32 : i32
    %10 = vector.broadcast %9 : i32 to vector<16x128xi32>
    %11 = arith.xori %7, %10 : vector<16x128xi32>
    %c16_i32 = arith.constant 16 : i32
    %12 = vector.broadcast %c16_i32 : i32 to vector<16x128xi32>
    %13 = arith.shrui %11, %12 : vector<16x128xi32>
    %14 = arith.xori %11, %13 : vector<16x128xi32>
    %c-2048144789_i32 = arith.constant -2048144789 : i32
    %15 = vector.broadcast %c-2048144789_i32 : i32 to vector<16x128xi32>
    %16 = arith.muli %14, %15 : vector<16x128xi32>
    %c13_i32 = arith.constant 13 : i32
    %17 = vector.broadcast %c13_i32 : i32 to vector<16x128xi32>
    %18 = arith.shrui %16, %17 : vector<16x128xi32>
    %19 = arith.xori %16, %18 : vector<16x128xi32>
    %c-1028477387_i32 = arith.constant -1028477387 : i32
    %20 = vector.broadcast %c-1028477387_i32 : i32 to vector<16x128xi32>
    %21 = arith.muli %19, %20 : vector<16x128xi32>
    %c16_i32_0 = arith.constant 16 : i32
    %22 = vector.broadcast %c16_i32_0 : i32 to vector<16x128xi32>
    %23 = arith.shrui %21, %22 : vector<16x128xi32>
    %24 = arith.xori %21, %23 : vector<16x128xi32>
    %c9_i32 = arith.constant 9 : i32
    %25 = vector.broadcast %c9_i32 : i32 to vector<16x128xi32>
    %26 = arith.shrui %24, %25 : vector<16x128xi32>
    %c1065353216_i32 = arith.constant 1065353216 : i32
    %27 = vector.broadcast %c1065353216_i32 : i32 to vector<16x128xi32>
    %28 = arith.ori %26, %27 : vector<16x128xi32>
    %29 = tpu.bitcast %28 : vector<16x128xi32> -> vector<16x128xf32>
    %cst = arith.constant 1.000000e+00 : f32
    %30 = vector.broadcast %cst : f32 to vector<16x128xf32>
    %31 = arith.subf %29, %30 : vector<16x128xf32>
    %cst_1 = arith.constant 5.96046448E-8 : f32
    %32 = vector.broadcast %cst_1 : f32 to vector<16x128xf32>
    %33 = arith.addf %31, %32 : vector<16x128xf32>
    %cst_2 = arith.constant 2.000000e+00 : f32
    %34 = vector.broadcast %cst_2 : f32 to vector<16x128xf32>
    %35 = arith.mulf %34, %33 : vector<16x128xf32>
    %cst_3 = arith.constant 1.000000e+00 : f32
    %36 = vector.broadcast %cst_3 : f32 to vector<16x128xf32>
    %37 = arith.subf %35, %36 : vector<16x128xf32>
    %cst_4 = arith.constant 1.000000e+00 : f32
    %38 = vector.broadcast %cst_4 : f32 to vector<16x128xf32>
    %39 = arith.subf %38, %37 : vector<16x128xf32>
    %cst_5 = arith.constant 1.000000e+00 : f32
    %40 = vector.broadcast %cst_5 : f32 to vector<16x128xf32>
    %41 = arith.addf %40, %37 : vector<16x128xf32>
    %42 = arith.mulf %39, %41 : vector<16x128xf32>
    %43 = math.log %42 : vector<16x128xf32>
    %cst_6 = arith.constant 0.000000e+00 : f32
    %44 = vector.broadcast %cst_6 : f32 to vector<16x128xf32>
    %45 = arith.subf %44, %43 : vector<16x128xf32>
    %cst_7 = arith.constant 5.000000e+00 : f32
    %46 = vector.broadcast %cst_7 : f32 to vector<16x128xf32>
    %47 = arith.cmpf olt, %45, %46 : vector<16x128xf32>
    %cst_8 = arith.constant 2.500000e+00 : f32
    %48 = vector.broadcast %cst_8 : f32 to vector<16x128xf32>
    %49 = arith.subf %45, %48 : vector<16x128xf32>
    %cst_9 = arith.constant 2.81022636E-8 : f32
    %50 = vector.broadcast %cst_9 : f32 to vector<16x128xf32>
    %51 = arith.mulf %50, %49 : vector<16x128xf32>
    %cst_10 = arith.constant 3.43273939E-7 : f32
    %52 = vector.broadcast %cst_10 : f32 to vector<16x128xf32>
    %53 = arith.addf %51, %52 : vector<16x128xf32>
    %54 = arith.mulf %53, %49 : vector<16x128xf32>
    %cst_11 = arith.constant -3.5233877E-6 : f32
    %55 = vector.broadcast %cst_11 : f32 to vector<16x128xf32>
    %56 = arith.addf %54, %55 : vector<16x128xf32>
    %57 = arith.mulf %56, %49 : vector<16x128xf32>
    %cst_12 = arith.constant -4.39150654E-6 : f32
    %58 = vector.broadcast %cst_12 : f32 to vector<16x128xf32>
    %59 = arith.addf %57, %58 : vector<16x128xf32>
    %60 = arith.mulf %59, %49 : vector<16x128xf32>
    %cst_13 = arith.constant 2.1858087E-4 : f32
    %61 = vector.broadcast %cst_13 : f32 to vector<16x128xf32>
    %62 = arith.addf %60, %61 : vector<16x128xf32>
    %63 = arith.mulf %62, %49 : vector<16x128xf32>
    %cst_14 = arith.constant -0.00125372503 : f32
    %64 = vector.broadcast %cst_14 : f32 to vector<16x128xf32>
    %65 = arith.addf %63, %64 : vector<16x128xf32>
    %66 = arith.mulf %65, %49 : vector<16x128xf32>
    %cst_15 = arith.constant -0.00417768164 : f32
    %67 = vector.broadcast %cst_15 : f32 to vector<16x128xf32>
    %68 = arith.addf %66, %67 : vector<16x128xf32>
    %69 = arith.mulf %68, %49 : vector<16x128xf32>
    %cst_16 = arith.constant 0.246640727 : f32
    %70 = vector.broadcast %cst_16 : f32 to vector<16x128xf32>
    %71 = arith.addf %69, %70 : vector<16x128xf32>
    %72 = arith.mulf %71, %49 : vector<16x128xf32>
    %cst_17 = arith.constant 1.50140941 : f32
    %73 = vector.broadcast %cst_17 : f32 to vector<16x128xf32>
    %74 = arith.addf %72, %73 : vector<16x128xf32>
    %75 = math.sqrt %45 : vector<16x128xf32>
    %cst_18 = arith.constant 3.000000e+00 : f32
    %76 = vector.broadcast %cst_18 : f32 to vector<16x128xf32>
    %77 = arith.subf %75, %76 : vector<16x128xf32>
    %cst_19 = arith.constant -2.00214257E-4 : f32
    %78 = vector.broadcast %cst_19 : f32 to vector<16x128xf32>
    %79 = arith.mulf %78, %77 : vector<16x128xf32>
    %cst_20 = arith.constant 1.00950558E-4 : f32
    %80 = vector.broadcast %cst_20 : f32 to vector<16x128xf32>
    %81 = arith.addf %79, %80 : vector<16x128xf32>
    %82 = arith.mulf %81, %77 : vector<16x128xf32>
    %cst_21 = arith.constant 0.00134934322 : f32
    %83 = vector.broadcast %cst_21 : f32 to vector<16x128xf32>
    %84 = arith.addf %82, %83 : vector<16x128xf32>
    %85 = arith.mulf %84, %77 : vector<16x128xf32>
    %cst_22 = arith.constant -0.00367342844 : f32
    %86 = vector.broadcast %cst_22 : f32 to vector<16x128xf32>
    %87 = arith.addf %85, %86 : vector<16x128xf32>
    %88 = arith.mulf %87, %77 : vector<16x128xf32>
    %cst_23 = arith.constant 0.00573950773 : f32
    %89 = vector.broadcast %cst_23 : f32 to vector<16x128xf32>
    %90 = arith.addf %88, %89 : vector<16x128xf32>
    %91 = arith.mulf %90, %77 : vector<16x128xf32>
    %cst_24 = arith.constant -0.0076224613 : f32
    %92 = vector.broadcast %cst_24 : f32 to vector<16x128xf32>
    %93 = arith.addf %91, %92 : vector<16x128xf32>
    %94 = arith.mulf %93, %77 : vector<16x128xf32>
    %cst_25 = arith.constant 0.00943887047 : f32
    %95 = vector.broadcast %cst_25 : f32 to vector<16x128xf32>
    %96 = arith.addf %94, %95 : vector<16x128xf32>
    %97 = arith.mulf %96, %77 : vector<16x128xf32>
    %cst_26 = arith.constant 1.00167406 : f32
    %98 = vector.broadcast %cst_26 : f32 to vector<16x128xf32>
    %99 = arith.addf %97, %98 : vector<16x128xf32>
    %100 = arith.mulf %99, %77 : vector<16x128xf32>
    %cst_27 = arith.constant 2.83297682 : f32
    %101 = vector.broadcast %cst_27 : f32 to vector<16x128xf32>
    %102 = arith.addf %100, %101 : vector<16x128xf32>
    %103 = arith.select %47, %74, %102 : vector<16x128xi1>, vector<16x128xf32>
    %cst_28 = arith.constant 1.41421354 : f32
    %104 = vector.broadcast %cst_28 : f32 to vector<16x128xf32>
    %105 = arith.mulf %104, %103 : vector<16x128xf32>
    %106 = arith.mulf %105, %37 : vector<16x128xf32>
    %c0_29 = arith.constant 0 : index
    %c0_30 = arith.constant 0 : index
    %107 = vector.load %arg2[%c0_29, %c0_30] : memref<16x128xf32, #tpu.memory_space<vmem>>, vector<16x128xf32>
    %c0_31 = arith.constant 0 : index
    %c0_32 = arith.constant 0 : index
    %108 = vector.load %arg3[%c0_31, %c0_32] : memref<16x128xf32, #tpu.memory_space<vmem>>, vector<16x128xf32>
    %cst_33 = arith.constant 5.000000e-01 : f32
    %109 = vector.broadcast %cst_33 : f32 to vector<16x128xf32>
    %110 = arith.mulf %109, %108 : vector<16x128xf32>
    %111 = math.exp %110 : vector<16x128xf32>
    %112 = arith.mulf %106, %111 : vector<16x128xf32>
    %113 = arith.addf %107, %112 : vector<16x128xf32>
    %c0_34 = arith.constant 0 : index
    %c0_35 = arith.constant 0 : index
    %114 = vector.load %arg4[%c0_34, %c0_35] : memref<16x128xf32, #tpu.memory_space<vmem>>, vector<16x128xf32>
    tpu.vector_store %arg4[%c0_34, %c0_35], %113 {strides = array<i32>} : memref<16x128xf32, #tpu.memory_space<vmem>>, vector<16x128xf32>,
    return
  }
  func.func @transform_0(%arg0: i32, %arg1: memref<1xi32, #tpu.memory_space<smem>>) -> (i32, i32) {
    %c0_i32 = arith.constant 0 : i32
    %c0_i32_0 = arith.constant 0 : i32
    return %arg0, %c0_i32 : i32, i32
  }
  func.func @transform_1(%arg0: i32, %arg1: memref<1xi32, #tpu.memory_space<smem>>) -> (i32, i32) {
    %c0_i32 = arith.constant 0 : i32
    %c0_i32_0 = arith.constant 0 : i32
    return %arg0, %c0_i32 : i32, i32
  }
  func.func @transform_2(%arg0: i32, %arg1: memref<1xi32, #tpu.memory_space<smem>>) -> (i32, i32) {
    %c0_i32 = arith.constant 0 : i32
    %c0_i32_0 = arith.constant 0 : i32
    return %arg0, %c0_i32 : i32, i32
  }
}

</mosaic_0001>

<bundles_post_ra>
// kernel: tpu_custom_call.1
= control target key start
LH: loop header
LB: loop body
LE: loop exit
PB: predicated region body
PF: predicated region fallthrough
CT: control target
= control target key end

     0   :  { %9 = vsyncpa [#allocation5], 0  ;;  %s443_s0 = inlined_call_operand.<no memory space> [shape: s32[1], index: 0, kind: input, shape index: {}]   ;;  %s444_s1 = inlined_call_operand.hbm [shape: f32[16,128], index: 1, kind: input, shape index: {}]   ;;  %s445_s2 = inlined_call_operand.hbm [shape: f32[16,128], index: 2, kind: input, shape index: {}]   ;;  %s446_s3 = inlined_call_operand.hbm [shape: f32[16,128], index: 3, kind: output, shape index: {}]  }
   0x1   :  { %10 = vsyncpa [#allocation8], 0 }
   0x2   :  { %11 = vsyncpa [#allocation6], 0  ;;  %s16_s14 = sshll.u32 %s444_s1, 4  ;;  %s345_s15 = smov [#allocation4]   ;;  %s17_s14 = int_to_ptr.hbm [resolvable:$true] %s16_s14 }
   0x3   :  { %s18_s16 = sshll.u32 %s345_s15, 4  ;;  %s29_s19 = sshll.u32 %s445_s2, 4  ;;  %s19_s16 = int_to_ptr.vmem [resolvable:$true] %s18_s16  ;;  %s30_s19 = int_to_ptr.hbm [resolvable:$true] %s29_s19 }
   0x4   :  { %s346_s20 = smov 128   ;;  %s347_s21 = smov 8  }
   0x5   :  { %24 = dma.hbm_to_vmem [thread:$0]  %s17_s14, 256, %s19_s16, [#allocation5], %s346_s20, %s346_s20, %s347_s21  }
   0x6   :  { %s348_s22 = smov [#allocation7]  }
   0x7   :  { %s31_s23 = sshll.u32 %s348_s22, 4  ;;  %s32_s23 = int_to_ptr.vmem [resolvable:$true] %s31_s23 }
   0x8   :  { %37 = dma.hbm_to_vmem [thread:$0]  %s30_s19, 256, %s32_s23, [#allocation8], %s346_s20, %s346_s20, %s347_s21  }
   0x9   :  { %339 = dma.done.wait [#allocation5], 256  }
   0xa   :  { %340 = vsyncadd [#allocation5], 4294967040 }
   0xb   :  { %341 = dma.done.wait [#allocation8], 256  }
   0xc   :  { %342 = vsyncadd [#allocation8], 4294967040  ;;  %v46_v0 = vlaneseq  ;;  %s60_s24 = sadd.s32 608135816, %s443_s0  ;;  %s349_s0 = smov [#allocation9]  }
   0xd   :  { %v61_v5 = vstv %s60_s24  ;;  %s226_s25 = sshll.u32 %s349_s0, 4  ;;  %s228_s28 = sshll.u32 %s446_s3, 4  ;;  %s227_s25 = int_to_ptr.vmem [resolvable:$true] %s226_s25  ;;  %s229_s28 = int_to_ptr.hbm [resolvable:$true] %s228_s28 }
   0xe   :  { %v47_v1 = vshrl.u32 %v46_v0, 7  ;;  %v50_v2 = vand.u32 127, %v46_v0 }
  0x10   :  { %v51_v3 = vmul.u32 128, %v47_v1  ;;  %v48_v4 = vadd.s32 8, %v47_v1 }
  0x12   :  { %v53_v6 = vadd.s32 %v51_v3, %v50_v2  ;;  %v52_v7 = vmul.u32 128, %v48_v4 }
  0x14   :  { %v62_v8 = vxor.u32 %v61_v5, %v53_v6  ;;  %v54_v9 = vadd.s32 %v52_v7, %v50_v2 }
  0x16   :  { %v64_v10 = vshrl.u32 %v62_v8, 16  ;;  %v63_v11 = vxor.u32 %v61_v5, %v54_v9 }
  0x18   :  { %v66_v12 = vxor.u32 %v64_v10, %v62_v8  ;;  %v65_v13 = vshrl.u32 %v63_v11, 16 }
  0x1a   :  { %v68_v14 = vmul.u32 2246822507, %v66_v12  ;;  %v67_v15 = vxor.u32 %v65_v13, %v63_v11 }
  0x1c   :  { %v70_v16 = vshrl.u32 %v68_v14, 13  ;;  %v69_v17 = vmul.u32 2246822507, %v67_v15 }
  0x1e   :  { %v72_v18 = vxor.u32 %v70_v16, %v68_v14  ;;  %v71_v19 = vshrl.u32 %v69_v17, 13 }
  0x20   :  { %v74_v20 = vmul.u32 3266489909, %v72_v18  ;;  %v73_v21 = vxor.u32 %v71_v19, %v69_v17 }
  0x22   :  { %v76_v22 = vshrl.u32 %v74_v20, 16  ;;  %v75_v23 = vmul.u32 3266489909, %v73_v21 }
  0x24   :  { %v78_v24 = vxor.u32 %v76_v22, %v74_v20  ;;  %v77_v25 = vshrl.u32 %v75_v23, 16 }
  0x26   :  { %v80_v26 = vshrl.u32 %v78_v24, 9  ;;  %v79_v27 = vxor.u32 %v77_v25, %v75_v23 }
  0x28   :  { %v82_v28 = vor.u32 1065353216, %v80_v26  ;;  %v81_v29 = vshrl.u32 %v79_v27, 9 }
  0x2a   :  { %v242_v30 = vadd.f32 -1.0, %v82_v28  ;;  %v83_v31 = vor.u32 1065353216, %v81_v29 }
  0x2c   :  { %v88_v32 = vadd.f32 5.9604645e-08, %v242_v30  ;;  %v243_v33 = vadd.f32 -1.0, %v83_v31 }
  0x2e   :  { %v90_v34 = vmul.f32 2.0, %v88_v32  ;;  %v89_v35 = vadd.f32 5.9604645e-08, %v243_v33 }
  0x30   :  { %v385_v36 = vadd.f32 -1.0, %v90_v34  ;;  %v91_v37 = vmul.f32 2.0, %v89_v35 }
  0x32   :  { %v94_v38 = vsub.f32 1.0, %v385_v36  ;;  %v96_v39 = vadd.f32 1.0, %v385_v36  ;;  %v389_v40 = vadd.f32 -1.0, %v91_v37 }
  0x34   :  { %v98_v41 = vmul.f32 %v96_v39, %v94_v38  ;;  %v95_v42 = vsub.f32 1.0, %v389_v40  ;;  %v97_v43 = vadd.f32 1.0, %v389_v40 }
  0x36   :  { %255 = vlog2.f32 %v98_v41  ;;  %v99_v44 = vmul.f32 %v97_v43, %v95_v42 }
  0x38   :  { %257 = vlog2.f32 %v99_v44 }
  0x3c   :  { %v256_v45 = vpop.eup %255 }
  0x3d   :  { %v101_v46 = vmul.f32 0.6931472, %v256_v45 }
  0x3e   :  { %v258_v47 = vpop.eup %257 }
  0x3f   :  { %v393_v48 = vsub.f32 0.0, %v101_v46  ;;  %v103_v49 = vmul.f32 0.6931472, %v258_v47 }
  0x41   :  { %v396_v50 = vadd.f32 -2.5, %v393_v48  ;;  %259 = vrsqrt.f32 %v393_v48  ;;  %v399_v51 = vsub.f32 0.0, %v103_v49  ;;  %vm149_vm0 = vcmp.eq.f32.partialorder %v393_v48, inf }
  0x42   :  { %v152_v12 = vand.u32 2147483648, %v393_v48  ;;  %vm151_vm1 = vcmp.eq.f32.partialorder %v393_v48, 0.0  ;;  %vm106_vm4 = vcmp.lt.f32.partialorder %v393_v48, 5.0 }
  0x43   :  { %v110_v52 = vmul.f32 2.8102264e-08, %v396_v50  ;;  %v403_v53 = vadd.f32 -2.5, %v399_v51  ;;  %261 = vrsqrt.f32 %v399_v51  ;;  %vm161_vm2 = vcmp.eq.f32.partialorder %v399_v51, inf }
  0x44   :  { %v164_v19 = vand.u32 2147483648, %v399_v51  ;;  %vm163_vm3 = vcmp.eq.f32.partialorder %v399_v51, 0.0  ;;  %vm107_vm5 = vcmp.lt.f32.partialorder %v399_v51, 5.0 }
  0x45   :  { %v112_v54 = vadd.f32 3.4327394e-07, %v110_v52  ;;  %v111_v55 = vmul.f32 2.8102264e-08, %v403_v53 }
  0x47   :  { %v260_v56 = vpop.eup %259  ;;  %v114_v57 = vmul.f32 %v396_v50, %v112_v54  ;;  %v113_v59 = vadd.f32 3.4327394e-07, %v111_v55 }
  0x48   :  { %v143_v58 = vmul.f32 %v260_v56, %v393_v48 }
  0x49   :  { %v116_v60 = vadd.f32 -3.5233877e-06, %v114_v57  ;;  %v262_v61 = vpop.eup %261  ;;  %v115_v63 = vmul.f32 %v403_v53, %v113_v59 }
  0x4a   :  { %v144_v62 = vmul.f32 %v260_v56, %v143_v58  ;;  %v155_v1 = vmul.f32 %v262_v61, %v399_v51  ;;  %v208_v58 = vld [vmem:[#allocation7] sm:$0xff] }
  0x4b   :  { %v118_v0 = vmul.f32 %v396_v50, %v116_v60  ;;  %v117_v3 = vadd.f32 -3.5233877e-06, %v115_v63 }
  0x4c   :  { %v145_v2 = vmul.f32 0.5, %v144_v62  ;;  %v156_v5 = vmul.f32 %v262_v61, %v155_v1  ;;  %v210_v1 = vmul.f32 0.5, %v208_v58 }
  0x4d   :  { %v120_v4 = vadd.f32 -4.3915065e-06, %v118_v0  ;;  %v119_v7 = vmul.f32 %v403_v53, %v117_v3 }
  0x4e   :  { %v146_v6 = vsub.f32 1.5, %v145_v2  ;;  %v157_v8 = vmul.f32 0.5, %v156_v5  ;;  %v209_v2 = vld [vmem:[#allocation7 + $0x8] sm:$0xff] }
  0x4f   :  { %v122_v9 = vmul.f32 %v396_v50, %v120_v4  ;;  %v121_v11 = vadd.f32 -4.3915065e-06, %v119_v7  ;;  %v211_v7 = vmul.f32 0.5, %v209_v2 }
  0x50   :  { %v147_v10 = vmul.f32 %v260_v56, %v146_v6  ;;  %v158_v13 = vsub.f32 1.5, %v157_v8 }
  0x51   :  { %v123_v15 = vmul.f32 %v403_v53, %v121_v11  ;;  %v124_v17 = vadd.f32 0.00021858087, %v122_v9 }
  0x52   :  { %v148_v14 = vmul.f32 %v147_v10, %v393_v48  ;;  %v159_v16 = vmul.f32 %v262_v61, %v158_v13  ;;  %v212_v10 = vmul.f32 1.442695, %v210_v1 }
  0x53   :  { %v125_v23 = vadd.f32 0.00021858087, %v123_v15  ;;  %v126_v25 = vmul.f32 %v396_v50, %v124_v17  ;;  %v214_v15 = vmul.f32 1.442695, %v211_v7 }
  0x54   :  { %v150_v18 = vsel %vm149_vm0, %v393_v48, %v148_v14  ;;  %v160_v21 = vmul.f32 %v159_v16, %v399_v51  ;;  %263 = vpow2.f32 %v212_v10 }
  0x55   :  { %v153_v20 = vsel %vm151_vm1, %v152_v12, %v150_v18  ;;  %v127_v30 = vmul.f32 %v403_v53, %v125_v23  ;;  %v128_v32 = vadd.f32 -0.001253725, %v126_v25  ;;  %265 = vpow2.f32 %v214_v15 }
  0x56   :  { %v248_v22 = vadd.f32 -3.0, %v153_v20  ;;  %v162_v24 = vsel %vm161_vm2, %v399_v51, %v160_v21 }
  0x57   :  { %v165_v27 = vsel %vm163_vm3, %v164_v19, %v162_v24  ;;  %v129_v37 = vadd.f32 -0.001253725, %v127_v30  ;;  %v130_v39 = vmul.f32 %v396_v50, %v128_v32  ;;  %v207_v32 = vld [vmem:[#allocation4 + $0x8] sm:$0xff] }
  0x58   :  { %v168_v26 = vmul.f32 -0.00020021426, %v248_v22  ;;  %v249_v28 = vadd.f32 -3.0, %v165_v27  ;;  %v206_v27 = vld [vmem:[#allocation4] sm:$0xff] }
  0x59   :  { %v131_v44 = vmul.f32 %v403_v53, %v129_v37  ;;  %v132_v46 = vadd.f32 -0.0041776816, %v130_v39 }
  0x5a   :  { %v170_v29 = vadd.f32 0.00010095056, %v168_v26  ;;  %v169_v31 = vmul.f32 -0.00020021426, %v249_v28  ;;  %v264_v25 = vpop.eup %263 }
  0x5b   :  { %v133_v54 = vadd.f32 -0.0041776816, %v131_v44  ;;  %v134_v56 = vmul.f32 %v396_v50, %v132_v46 }
  0x5c   :  { %v172_v33 = vmul.f32 %v248_v22, %v170_v29  ;;  %v171_v34 = vadd.f32 0.00010095056, %v169_v31 }
  0x5d   :  { %v135_v61 = vmul.f32 %v403_v53, %v133_v54  ;;  %v136_v63 = vadd.f32 0.24664073, %v134_v56 }
  0x5e   :  { %v174_v35 = vadd.f32 0.0013493432, %v172_v33  ;;  %v173_v38 = vmul.f32 %v249_v28, %v171_v34 }
  0x5f   :  { %v137_v5 = vadd.f32 0.24664073, %v135_v61  ;;  %v138_v8 = vmul.f32 %v396_v50, %v136_v63 }
  0x60   :  { %v176_v41 = vmul.f32 %v248_v22, %v174_v35  ;;  %v175_v42 = vadd.f32 0.0013493432, %v173_v38 }
  0x61   :  { %v139_v13 = vmul.f32 %v403_v53, %v137_v5  ;;  %v140_v16 = vadd.f32 1.5014094, %v138_v8 }
  0x62   :  { %v178_v43 = vadd.f32 -0.0036734284, %v176_v41  ;;  %v177_v45 = vmul.f32 %v249_v28, %v175_v42 }
  0x63   :  { %v141_v20 = vadd.f32 1.5014094, %v139_v13 }
  0x64   :  { %v180_v47 = vmul.f32 %v248_v22, %v178_v43  ;;  %v179_v49 = vadd.f32 -0.0036734284, %v177_v45 }
  0x66   :  { %v182_v52 = vadd.f32 0.0057395077, %v180_v47  ;;  %v181_v55 = vmul.f32 %v249_v28, %v179_v49 }
  0x68   :  { %v184_v57 = vmul.f32 %v248_v22, %v182_v52  ;;  %v183_v59 = vadd.f32 0.0057395077, %v181_v55 }
  0x6a   :  { %v186_v60 = vadd.f32 -0.0076224613, %v184_v57  ;;  %v185_v62 = vmul.f32 %v249_v28, %v183_v59 }
  0x6c   :  { %v188_v0 = vmul.f32 %v248_v22, %v186_v60  ;;  %v187_v3 = vadd.f32 -0.0076224613, %v185_v62 }
  0x6e   :  { %v190_v4 = vadd.f32 0.0094388705, %v188_v0  ;;  %v189_v6 = vmul.f32 %v249_v28, %v187_v3 }
  0x70   :  { %v192_v9 = vmul.f32 %v248_v22, %v190_v4  ;;  %v191_v11 = vadd.f32 0.0094388705, %v189_v6 }
  0x72   :  { %v194_v12 = vadd.f32 1.001674, %v192_v9  ;;  %v193_v14 = vmul.f32 %v249_v28, %v191_v11 }
  0x74   :  { %v196_v17 = vmul.f32 %v248_v22, %v194_v12  ;;  %v195_v18 = vadd.f32 1.001674, %v193_v14  ;;  %v266_v22 = vpop.eup %265 }
  0x76   :  { %v198_v19 = vadd.f32 2.8329768, %v196_v17  ;;  %v197_v21 = vmul.f32 %v249_v28, %v195_v18 }
  0x78   :  { %v200_v23 = vsel %vm106_vm4, %v140_v16, %v198_v19  ;;  %v199_v24 = vadd.f32 2.8329768, %v197_v21 }
  0x79   :  { %v202_v50 = vmul.f32 1.4142135, %v200_v23 }
  0x7a   :  { %v201_v26 = vsel %vm107_vm5, %v141_v20, %v199_v24 }
  0x7b   :  { %v204_v53 = vmul.f32 %v385_v36, %v202_v50  ;;  %v203_v29 = vmul.f32 1.4142135, %v201_v26 }
  0x7d   :  { %v216_v30 = vmul.f32 %v264_v25, %v204_v53  ;;  %v205_v48 = vmul.f32 %v389_v40, %v203_v29 }
  0x7f   :  { %v218_v31 = vadd.f32 %v216_v30, %v206_v27  ;;  %v217_v51 = vmul.f32 %v266_v22, %v205_v48 }
  0x81   :  { %220 = vst [vmem:[#allocation9] sm:$0xff] %v218_v31  ;;  %v219_v28 = vadd.f32 %v217_v51, %v207_v32 }
  0x83   :  { %221 = vst [vmem:[#allocation9 + $0x8] sm:$0xff] %v219_v28 }
  0x84   :  { %234 = dma.vmem_to_hbm [thread:$0]  %s227_s25, 256, %s229_s28, [#allocation6], %s346_s20, %s346_s20, %s347_s21  }
  0x85   :  { %343 = dma.done.wait [#allocation6], 256  }
  0x86   :  { %344 = vsyncadd [#allocation6], 4294967040 }
  0x87   :  { %239 = vsyncpa [#allocation5], 1 }
  0x88   :  { %240 = vsyncpa [#allocation8], 1 }
  0x89   :  { %241 = vsyncpa [#allocation6], 1 }

</bundles_post_ra>
